<compile_context>
chip_gen: v7x
topology: tpu7x:2x2x1
jax: 0.10.0
libtpu: 0.0.40
codegen_flags: <defaults>
</compile_context>

<pallas_src>
import math

import jax
import jax.numpy as jnp
from jax import lax
from jax.experimental import pallas as pl
from jax.experimental.pallas import tpu as pltpu


def _log_sigmoid(x):
    # Numerically stable logsigmoid(x) = -softplus(-x), computed in f32.
    return -(jnp.maximum(-x, 0.0) + jnp.log1p(jnp.exp(-jnp.abs(x))))


def triplet_kernel(n_ref, pos_u_ref, pos_v_ref, neg_v_ref, w_ref, b_ref, o_ref):
    i = pl.program_id(0)
    tb = pos_u_ref.shape[0]

    w = w_ref[...]          # (E, D), PyTorch nn.Linear.weight layout
    b = b_ref[...]          # (E, 1)

    # emb^T = W @ x^T, expressed as a dot_general contracting the LAST dims of
    # both operands (lowers to an MXU matmul with transposed RHS; no
    # materialized transpose).  Output (E, tb) is fully lane-dense.
    dims = (((1,), (1,)), ((), ()))
    emb_u = lax.dot_general(w, pos_u_ref[...], dims,
                            preferred_element_type=jnp.float32) + b   # (E, tb)
    emb_v = lax.dot_general(w, pos_v_ref[...], dims,
                            preferred_element_type=jnp.float32) + b   # (E, tb)
    emb_n = lax.dot_general(w, neg_v_ref[...], dims,
                            preferred_element_type=jnp.float32) + b   # (E, tb)

    # Row-wise dots over the embedding dim -> sublane reduce, lane-dense rows.
    pos_row = jnp.sum(emb_u * emb_v, axis=0, keepdims=True)           # (1, tb)
    neg_row = jnp.sum(emb_n * emb_u, axis=0, keepdims=True)           # (1, tb)

    # Pack both score rows so the logsigmoid transcendentals run on full
    # 128-lane vregs (the EUP was the binding slot in the lane-sparse layout).
    scores = jnp.concatenate([pos_row, -neg_row], axis=0)             # (2, tb)
    ls = _log_sigmoid(scores)                                         # (2, tb)

    # Mask columns that are only batch padding (last block may be partial).
    col = jax.lax.broadcasted_iota(jnp.int32, (2, tb), 1) + i * tb
    contrib = jnp.where(col < n_ref[0], ls, 0.0)

    # Per-block partial sum written lane-dense as a full (1, 8, 128) tile
    # (unmasked vector stores; summed + negated in the wrapper).
    partial = jnp.sum(contrib)
    o_ref[...] = jnp.broadcast_to(partial, o_ref.shape)


def triplet_forward(pos_u, pos_v, neg_v, weight, bias, *, tb=512):
    """pos_u/pos_v/neg_v: (B, D); weight: (E, D) (PyTorch layout); bias: (E,)."""
    B, D = pos_u.shape
    E = weight.shape[0]
    bias = bias.reshape(E, 1)

    # Keep tb a multiple of 16 (f32 needs 8, bf16 inputs need 16 sublanes).
    tb = max(16, 16 * (int(tb) // 16))
    # Keep >= 2 batch blocks when possible so v7x's two TensorCores both get
    # grid work, while still using large tiles to amortize per-step overhead.
    if B >= 32:
        tb = min(tb, 16 * pl.cdiv(pl.cdiv(B, 2), 16))

    nb = pl.cdiv(B, tb)
    b_pad = nb * tb
    if b_pad != B:
        pad = ((0, b_pad - B), (0, 0))
        pos_u = jnp.pad(pos_u, pad)
        pos_v = jnp.pad(pos_v, pad)
        neg_v = jnp.pad(neg_v, pad)

    n_rows = jnp.array([B], dtype=jnp.int32)   # scalar-prefetch batch size

    partials = pl.pallas_call(
        triplet_kernel,
        out_shape=jax.ShapeDtypeStruct((nb, 8, 128), jnp.float32),
        grid_spec=pltpu.PrefetchScalarGridSpec(
            num_scalar_prefetch=1,
            grid=(nb,),
            in_specs=[
                pl.BlockSpec((tb, D), lambda i, n: (i, 0)),  # pos_u, streamed
                pl.BlockSpec((tb, D), lambda i, n: (i, 0)),  # pos_v, streamed
                pl.BlockSpec((tb, D), lambda i, n: (i, 0)),  # neg_v, streamed
                pl.BlockSpec((E, D), lambda i, n: (0, 0)),   # weight, resident
                pl.BlockSpec((E, 1), lambda i, n: (0, 0)),   # bias,   resident
            ],
            out_specs=pl.BlockSpec((1, 8, 128), lambda i, n: (i, 0, 0)),
        ),
        compiler_params=pltpu.CompilerParams(
            dimension_semantics=("parallel",)),
    )(n_rows, pos_u, pos_v, neg_v, weight, bias)

    # Final tiny reduction over per-block partials in plain JAX.
    return -jnp.sum(partials[:, 0, 0])


def reference_forward(pos_u, pos_v, neg_v, weight, bias):
    emb_u = pos_u @ weight.T + bias
    emb_v = pos_v @ weight.T + bias
    emb_n = neg_v @ weight.T + bias
    pos_score = jax.nn.log_sigmoid(jnp.sum(emb_u * emb_v, axis=-1))
    neg_score = jax.nn.log_sigmoid(-jnp.sum(emb_n * emb_u, axis=-1))
    return -(jnp.sum(pos_score) + jnp.sum(neg_score))


if __name__ == "__main__":
    B = 200          # non-multiple of the tile to exercise padding + 2-block grid
    input_size = 16
    embed_dim = 32

    key = jax.random.PRNGKey(0)
    k_u, k_v, k_n, k_w, k_b = jax.random.split(key, 5)

    pos_u = jax.random.normal(k_u, (B, input_size), dtype=jnp.float32)
    pos_v = jax.random.normal(k_v, (B, input_size), dtype=jnp.float32)
    neg_v = jax.random.normal(k_n, (B, input_size), dtype=jnp.float32)

    # Parameter init matching the module's __init__ (num_layers=1):
    # weight ~ N(0, 1/sqrt(embed_dim)), stored in PyTorch (embed_dim, input_size)
    # layout; bias ~ U(-1/sqrt(fan_in), 1/sqrt(fan_in)).
    init_scale = 1.0 / math.sqrt(embed_dim)
    weight = init_scale * jax.random.normal(
        k_w, (embed_dim, input_size), dtype=jnp.float32)
    bias_bound = 1.0 / math.sqrt(input_size)
    bias = jax.random.uniform(k_b, (embed_dim,), dtype=jnp.float32,
                              minval=-bias_bound, maxval=bias_bound)

    out = triplet_forward(pos_u, pos_v, neg_v, weight, bias)
    out = jax.block_until_ready(out)

    ref = reference_forward(pos_u, pos_v, neg_v, weight, bias)
    assert jnp.allclose(out, ref, atol=1e-4, rtol=1e-4), (out, ref)

    print("KERNEL_OK")
</pallas_src>

<mosaic_0001>
module attributes {stable_mosaic.version = 11 : i64} {
  func.func @triplet_kernel(%arg0: i32, %arg1: memref<1xi32, #tpu.memory_space<smem>>, %arg2: memref<112x16xf32, #tpu.memory_space<vmem>>, %arg3: memref<112x16xf32, #tpu.memory_space<vmem>>, %arg4: memref<112x16xf32, #tpu.memory_space<vmem>>, %arg5: memref<32x16xf32, #tpu.memory_space<vmem>>, %arg6: memref<32x1xf32, #tpu.memory_space<vmem>>, %arg7: memref<1x8x128xf32, #tpu.memory_space<vmem>>) attributes {dimension_semantics = [#tpu.dimension_semantics<parallel>], iteration_bounds = array<i64: 2>, scalar_prefetch = 1 : i64, scratch_operands = 0 : i64, tpu.core_type = #tpu.core_type<tc>, window_params = [{transform_indices = @transform_0, window_bounds = array<i64: 112, 16>}, {transform_indices = @transform_1, window_bounds = array<i64: 112, 16>}, {transform_indices = @transform_2, window_bounds = array<i64: 112, 16>}, {pipeline_mode = #tpu.pipeline_mode<synchronous>, transform_indices = @transform_3, window_bounds = array<i64: 32, 16>}, {pipeline_mode = #tpu.pipeline_mode<synchronous>, transform_indices = @transform_4, window_bounds = array<i64: 32, 1>}, {transform_indices = @transform_5, window_bounds = array<i64: 1, 8, 128>}]} {
    %c0 = arith.constant 0 : index
    %c0_0 = arith.constant 0 : index
    %0 = vector.load %arg5[%c0, %c0_0] : memref<32x16xf32, #tpu.memory_space<vmem>>, vector<32x16xf32>
    %c0_1 = arith.constant 0 : index
    %c0_2 = arith.constant 0 : index
    %1 = vector.load %arg6[%c0_1, %c0_2] : memref<32x1xf32, #tpu.memory_space<vmem>>, vector<32x1xf32>
    %c0_3 = arith.constant 0 : index
    %c0_4 = arith.constant 0 : index
    %2 = vector.load %arg2[%c0_3, %c0_4] : memref<112x16xf32, #tpu.memory_space<vmem>>, vector<112x16xf32>
    %cst = arith.constant dense<0.000000e+00> : vector<32x112xf32>
    %3 = tpu.matmul %0, %2, %cst {dimension_numbers = #tpu.dot_dimension_numbers<[1], [1], [0], [0], [0, 0, 1, 0], [], []>} : vector<32x16xf32>, vector<112x16xf32>, vector<32x112xf32> -> vector<32x112xf32>
    %4 = vector.broadcast %1 : vector<32x1xf32> to vector<32x112xf32>
    %5 = arith.addf %3, %4 : vector<32x112xf32>
    %c0_5 = arith.constant 0 : index
    %c0_6 = arith.constant 0 : index
    %6 = vector.load %arg3[%c0_5, %c0_6] : memref<112x16xf32, #tpu.memory_space<vmem>>, vector<112x16xf32>
    %cst_7 = arith.constant dense<0.000000e+00> : vector<32x112xf32>
    %7 = tpu.matmul %0, %6, %cst_7 {dimension_numbers = #tpu.dot_dimension_numbers<[1], [1], [0], [0], [0, 0, 1, 0], [], []>} : vector<32x16xf32>, vector<112x16xf32>, vector<32x112xf32> -> vector<32x112xf32>
    %8 = vector.broadcast %1 : vector<32x1xf32> to vector<32x112xf32>
    %9 = arith.addf %7, %8 : vector<32x112xf32>
    %c0_8 = arith.constant 0 : index
    %c0_9 = arith.constant 0 : index
    %10 = vector.load %arg4[%c0_8, %c0_9] : memref<112x16xf32, #tpu.memory_space<vmem>>, vector<112x16xf32>
    %cst_10 = arith.constant dense<0.000000e+00> : vector<32x112xf32>
    %11 = tpu.matmul %0, %10, %cst_10 {dimension_numbers = #tpu.dot_dimension_numbers<[1], [1], [0], [0], [0, 0, 1, 0], [], []>} : vector<32x16xf32>, vector<112x16xf32>, vector<32x112xf32> -> vector<32x112xf32>
    %12 = vector.broadcast %1 : vector<32x1xf32> to vector<32x112xf32>
    %13 = arith.addf %11, %12 : vector<32x112xf32>
    %14 = arith.mulf %5, %9 : vector<32x112xf32>
    %cst_11 = arith.constant dense<0.000000e+00> : vector<112xf32>
    %15 = vector.multi_reduction <add>, %14, %cst_11 [0] : vector<32x112xf32> to vector<112xf32>
    %16 = vector.shape_cast %15 : vector<112xf32> to vector<1x112xf32>
    %17 = arith.mulf %13, %5 : vector<32x112xf32>
    %cst_12 = arith.constant dense<0.000000e+00> : vector<112xf32>
    %18 = vector.multi_reduction <add>, %17, %cst_12 [0] : vector<32x112xf32> to vector<112xf32>
    %19 = vector.shape_cast %18 : vector<112xf32> to vector<1x112xf32>
    %cst_13 = arith.constant 0.000000e+00 : f32
    %20 = vector.broadcast %cst_13 : f32 to vector<1x112xf32>
    %21 = arith.subf %20, %19 : vector<1x112xf32>
    %22 = tpu.concatenate %16, %21 in 0 : vector<1x112xf32>, vector<1x112xf32> -> vector<2x112xf32>
    %cst_14 = arith.constant 0.000000e+00 : f32
    %23 = vector.broadcast %cst_14 : f32 to vector<2x112xf32>
    %24 = arith.subf %23, %22 : vector<2x112xf32>
    %cst_15 = arith.constant 0.000000e+00 : f32
    %25 = vector.broadcast %cst_15 : f32 to vector<2x112xf32>
    %26 = arith.maximumf %24, %25 : vector<2x112xf32>
    %27 = math.absf %22 : vector<2x112xf32>
    %cst_16 = arith.constant 0.000000e+00 : f32
    %28 = vector.broadcast %cst_16 : f32 to vector<2x112xf32>
    %29 = arith.subf %28, %27 : vector<2x112xf32>
    %30 = math.exp %29 : vector<2x112xf32>
    %31 = math.log1p %30 : vector<2x112xf32>
    %32 = arith.addf %26, %31 : vector<2x112xf32>
    %cst_17 = arith.constant 0.000000e+00 : f32
    %33 = vector.broadcast %cst_17 : f32 to vector<2x112xf32>
    %34 = arith.subf %33, %32 : vector<2x112xf32>
    %35 = tpu.iota {dimensions = array<i32: 1>} : vector<2x112xi32>
    %c112_i32 = arith.constant 112 : i32
    %36 = arith.muli %arg0, %c112_i32 : i32
    %37 = vector.broadcast %36 : i32 to vector<2x112xi32>
    %38 = arith.addi %35, %37 : vector<2x112xi32>
    %c0_18 = arith.constant 0 : index
    %39 = memref.load %arg1[%c0_18] : memref<1xi32, #tpu.memory_space<smem>>
    %40 = vector.broadcast %39 : i32 to vector<2x112xi32>
    %41 = arith.cmpi slt, %38, %40 : vector<2x112xi32>
    %cst_19 = arith.constant 0.000000e+00 : f32
    %42 = vector.broadcast %cst_19 : f32 to vector<2x112xf32>
    %43 = arith.select %41, %34, %42 : vector<2x112xi1>, vector<2x112xf32>
    %44 = vector.shape_cast %43 : vector<2x112xf32> to vector<1x2x112xf32>
    %cst_20 = arith.constant dense<0.000000e+00> : vector<1xf32>
    %45 = vector.multi_reduction <add>, %44, %cst_20 [1, 2] : vector<1x2x112xf32> to vector<1xf32>
    %46 = vector.shape_cast %45 : vector<1xf32> to vector<1x1x1xf32>
    %47 = vector.extract %46[0, 0, 0] : f32 from vector<1x1x1xf32>
    %48 = vector.broadcast %47 : f32 to vector<1x8x128xf32>
    %c0_21 = arith.constant 0 : index
    %c0_22 = arith.constant 0 : index
    %c0_23 = arith.constant 0 : index
    %49 = vector.load %arg7[%c0_21, %c0_22, %c0_23] : memref<1x8x128xf32, #tpu.memory_space<vmem>>, vector<1x8x128xf32>
    tpu.vector_store %arg7[%c0_21, %c0_22, %c0_23], %48 {strides = array<i32>} : memref<1x8x128xf32, #tpu.memory_space<vmem>>, vector<1x8x128xf32>,
    return
  }
  func.func @transform_0(%arg0: i32, %arg1: memref<1xi32, #tpu.memory_space<smem>>) -> (i32, i32) {
    %c0_i32 = arith.constant 0 : i32
    %c0_i32_0 = arith.constant 0 : i32
    return %arg0, %c0_i32 : i32, i32
  }
  func.func @transform_1(%arg0: i32, %arg1: memref<1xi32, #tpu.memory_space<smem>>) -> (i32, i32) {
    %c0_i32 = arith.constant 0 : i32
    %c0_i32_0 = arith.constant 0 : i32
    return %arg0, %c0_i32 : i32, i32
  }
  func.func @transform_2(%arg0: i32, %arg1: memref<1xi32, #tpu.memory_space<smem>>) -> (i32, i32) {
    %c0_i32 = arith.constant 0 : i32
    %c0_i32_0 = arith.constant 0 : i32
    return %arg0, %c0_i32 : i32, i32
  }
  func.func @transform_3(%arg0: i32, %arg1: memref<1xi32, #tpu.memory_space<smem>>) -> (i32, i32) {
    %c0_i32 = arith.constant 0 : i32
    %c0_i32_0 = arith.constant 0 : i32
    %c0_i32_1 = arith.constant 0 : i32
    return %c0_i32, %c0_i32_0 : i32, i32
  }
  func.func @transform_4(%arg0: i32, %arg1: memref<1xi32, #tpu.memory_space<smem>>) -> (i32, i32) {
    %c0_i32 = arith.constant 0 : i32
    %c0_i32_0 = arith.constant 0 : i32
    %c0_i32_1 = arith.constant 0 : i32
    return %c0_i32, %c0_i32_0 : i32, i32
  }
  func.func @transform_5(%arg0: i32, %arg1: memref<1xi32, #tpu.memory_space<smem>>) -> (i32, i32, i32) {
    %c0_i32 = arith.constant 0 : i32
    %c0_i32_0 = arith.constant 0 : i32
    %c0_i32_1 = arith.constant 0 : i32
    return %arg0, %c0_i32, %c0_i32_0 : i32, i32, i32
  }
}

</mosaic_0001>

<bundles_post_ra>
// kernel: tpu_custom_call.1
= control target key start
LH: loop header
LB: loop body
LE: loop exit
PB: predicated region body
PF: predicated region fallthrough
CT: control target
= control target key end

     0   :  { %s1749_s0 = inlined_call_operand.<no memory space> [shape: s32[1], index: 0, kind: input, shape index: {}]   ;;  %s1750_s1 = inlined_call_operand.vmem [shape: f32[224,16], index: 1, kind: input, shape index: {}]   ;;  %s1751_s2 = inlined_call_operand.vmem [shape: f32[224,16], index: 2, kind: input, shape index: {}]   ;;  %s1752_s3 = inlined_call_operand.vmem [shape: f32[224,16], index: 3, kind: input, shape index: {}]   ;;  %s1753_s4 = inlined_call_operand.vmem [shape: f32[32,16], index: 4, kind: input, shape index: {}]   ;;  %s1754_s5 = inlined_call_operand.vmem [shape: f32[32,1], index: 5, kind: input, shape index: {}]   ;;  %s1755_s6 = inlined_call_operand.hbm [shape: f32[2,8,128], index: 6, kind: output, shape index: {}]  }
   0x1   :  { %11 = sst [smem:[#allocation3]] %s1749_s0 }
   0x2   :  { %12 = vsyncpa [#allocation5], 0 }
   0x3   :  { %14 = vsyncpa [#allocation5 + $0x1], 0  ;;  %s1423_s23 = smov 0   ;;  %s1425_s24 = smov 0  }
   0x4   :  { %s1427_s25 = smov 0   ;;  %s1429_s26 = smov 0  }
   0x5 LB: > { %s1444_s0 = sadd.s32 4294967295, %s1381_s26   ;;  %s909_s27 = sadd.s32 4294967294, %s1381_s26   ;;  %s1381_s26 = sphi %s1429_s26, %s1763_s26   ;;  %s1377_s25 = sphi %s1427_s25, %s1762_s25   ;;  %s1373_s24 = sphi %s1425_s24, %s1761_s24   ;;  %s1369_s23 = sphi %s1423_s23, %s1760_s23  }
   0x6   : > { %s1448_s28 = sadd.s32 1, %s1381_s26   ;;  %s147_s29 = sadd.s32 1, %s1377_s25 }
   0x7   : > { %s144_s30 = ssub.s32 %s1381_s26, %s1448_s28  ;;  %p157_p0 = scmp.ne.s32.totalorder %s1377_s25, %s1373_s24 }
   0x8   : > { %p145_p1 = scmp.eq.s32.totalorder %s144_s30, 0  ;;  %p158_p2 = scmp.eq.s32.totalorder %s1444_s0, 1 }
   0x9   : > { %p163_p3 = scmp.ne.s32.totalorder %s1373_s24, %s1369_s23  ;;  %p164_p4 = scmp.eq.s32.totalorder %s909_s27, 1 }
   0xa   : > { %s1459_s7 = scalar_select %p145_p1, %s1377_s25, %s147_s29  }
   0xb   : > { %p1461_p5 = por %p158_p2, %p157_p0  ;;  %p1465_p6 = por %p164_p4, %p163_p3 }
   0xc   : > { %p912_p7 = scmp.ge.s32.totalorder %s1381_s26, 1  ;;  %p215_p8 = scmp.lt.s32.totalorder %s1381_s26, 3 }
   0xe   : > { %p216_p9 = pnand %p912_p7, %p215_p8 }
   0xf   : > { %s253_s10 = smul.u32 (!%p216_p9), 14, %s1444_s0  ;;  %vm313_vm0 = vcmask (!%p216_p9), 130048   ;;  %v1475_v0 = vld [vmem:[%s1753_s4] sm:$0xff] (!%p216_p9)  ;;  %v1383_v2 = vmov (!%p216_p9), 0   ;;  %v277_v3 = vld [vmem:[%s1754_s5 + $0x10] sm:$0xff] (!%p216_p9)  ;;  %v276_v4 = vld [vmem:[%s1754_s5 + $0x8] sm:$0xff] (!%p216_p9) }
  0x10   : > { %219 = sbr.rel (%p216_p9) target bundleno = 638 (0x27e), region = 40  ;;  %1057 = vmatprep.mubr.msk.f32.mxu0 (!%p216_p9), %vm313_vm0, %v1475_v0  ;;  %1091 = vmatprep.mubr.msk.f32.mxu1 (!%p216_p9), %vm313_vm0, %v1475_v0  ;;  %v275_v1 = vld [vmem:[%s1754_s5] sm:$0xff] (!%p216_p9)  ;;  %v278_v5 = vld [vmem:[%s1754_s5 + $0x18] sm:$0xff] (!%p216_p9)  ;;  %vm1503_vm1 = vmpackc.low (!%p216_p9), %vm313_vm0, %vm313_vm0  ;;  %vm739_vm2 = vcmask (!%p216_p9), 916480   ;;  %vm771_vm3 = vcmask (!%p216_p9), 1040384   ;;  %s795_s22 = sld [smem:[#allocation3]] (!%p216_p9) }
  0x11   : > { %p254_p10 = scmp.lt.s32.totalorder (!%p216_p9), %s253_s10, 27  ;;  %1313 = vset.pattern.permute.xlu0 (!%p216_p9), %v1383_v2  ;;  %1314 = vset.pattern.permute.xlu1 (!%p216_p9), %v1383_v2  ;;  %v272_v54 = vld [vmem:[%s1753_s4 + $0x8] sm:$0xff] (!%p216_p9)  ;;  %v273_v55 = vld [vmem:[%s1753_s4 + $0x10] sm:$0xff] (!%p216_p9)  ;;  %v274_v57 = vld [vmem:[%s1753_s4 + $0x18] sm:$0xff] (!%p216_p9)  ;;  %vm799_vm6 = vcmask (!%p216_p9), 910336   ;;  %s250_s27 = sand.u32 (!%p216_p9), 1, %s1373_s24  }
  0x12   : > { %295 = vperm.xlu0 (!%p216_p9), %1313, %v275_v1   ;;  %305 = vperm.xlu1 (!%p216_p9), %1314, %v277_v3   ;;  %s813_s16 = scalar_lea.sflag (!%p216_p9), [#allocation5], %s250_s27 }
  0x16   : > { %300 = vperm.xlu0 (!%p216_p9), %1313, %v276_v4   ;;  %310 = vperm.xlu1 (!%p216_p9), %1314, %v278_v5  }
  0x17   : > { %s1765_s10 = smov (!%p254_p10, %s253_s10), 27 }
  0x18   : > { %s1493_s21 = sshll.u32 %s1765_s10, 3 }
  0x19   : > { %s1499_s29 = scalar_lea.vmem %s1750_s1, %s1493_s21  ;;  %s1513_s11 = scalar_lea.vmem %s1751_s2, %s1493_s21 }
  0x1a   : > { %v279_v7 = vld [vmem:[%s1499_s29] sm:$0xff]  ;;  %v280_v8 = vld [vmem:[%s1499_s29 + $0x8] sm:$0xff]  ;;  %v281_v9 = vld [vmem:[%s1499_s29 + $0x10] sm:$0xff]  ;;  %s1589_s14 = scalar_lea.vmem %s1752_s3, %s1493_s21  ;;  %s792_s21 = smul.u32 112, %s1444_s0 }
  0x1b   : > { %v1131_v10 = vpack.c.bf16 %v280_v8, %v279_v7  ;;  %v453_v11 = vld [vmem:[%s1513_s11] sm:$0xff]  ;;  %v454_v12 = vld [vmem:[%s1513_s11 + $0x8] sm:$0xff]  ;;  %v282_v13 = vld [vmem:[%s1499_s29 + $0x18] sm:$0xff] }
  0x1c   : > { %v1173_v14 = vpack.c.bf16 %v454_v12, %v453_v11  ;;  %v1137_v15 = vpack.c.bf16 %v282_v13, %v281_v9  ;;  %v455_v16 = vld [vmem:[%s1513_s11 + $0x10] sm:$0xff]  ;;  %v456_v17 = vld [vmem:[%s1513_s11 + $0x18] sm:$0xff]  ;;  %v283_v19 = vld [vmem:[%s1499_s29 + $0x20] sm:$0xff] }
  0x1d   : > { %1133 = vmatprep.subr.msk.bf16.mxu0 %vm1503_vm1, %v1131_v10  ;;  %v1179_v18 = vpack.c.bf16 %v456_v17, %v455_v16  ;;  %v284_v20 = vld [vmem:[%s1499_s29 + $0x28] sm:$0xff]  ;;  %v457_v21 = vld [vmem:[%s1513_s11 + $0x20] sm:$0xff]  ;;  %v285_v25 = vld [vmem:[%s1499_s29 + $0x30] sm:$0xff] }
  0x1e   : > { %1175 = vmatprep.subr.msk.bf16.mxu1 %vm1503_vm1, %v1173_v14  ;;  %1136 = vmatpush3.bf16.xpose.msk.msra.mxu0 %vm1503_vm1, %v1131_v10  ;;  %v458_v22 = vld [vmem:[%s1513_s11 + $0x28] sm:$0xff]  ;;  %v1143_v23 = vpack.c.bf16 %v284_v20, %v283_v19  ;;  %v286_v26 = vld [vmem:[%s1499_s29 + $0x38] sm:$0xff]  ;;  %v459_v27 = vld [vmem:[%s1513_s11 + $0x30] sm:$0xff] }
  0x1f   : > { %1178 = vmatpush3.bf16.xpose.msk.msra.mxu1 %vm1503_vm1, %v1173_v14  ;;  %1139 = vmatprep.subr.msk.bf16.mxu0 %vm1503_vm1, %v1137_v15  ;;  %v1185_v24 = vpack.c.bf16 %v458_v22, %v457_v21  ;;  %v460_v28 = vld [vmem:[%s1513_s11 + $0x38] sm:$0xff]  ;;  %v1149_v29 = vpack.c.bf16 %v286_v26, %v285_v25  ;;  %v287_v31 = vld [vmem:[%s1499_s29 + $0x40] sm:$0xff]  ;;  %v288_v32 = vld [vmem:[%s1499_s29 + $0x48] sm:$0xff] }
  0x20   : > { %1181 = vmatprep.subr.msk.bf16.mxu1 %vm1503_vm1, %v1179_v18  ;;  %v1191_v30 = vpack.c.bf16 %v460_v28, %v459_v27  ;;  %v461_v33 = vld [vmem:[%s1513_s11 + $0x40] sm:$0xff]  ;;  %v462_v34 = vld [vmem:[%s1513_s11 + $0x48] sm:$0xff]  ;;  %v1155_v35 = vpack.c.bf16 %v288_v32, %v287_v31  ;;  %v289_v37 = vld [vmem:[%s1499_s29 + $0x50] sm:$0xff] }
  0x21   : > { %v1197_v36 = vpack.c.bf16 %v462_v34, %v461_v33  ;;  %v290_v38 = vld [vmem:[%s1499_s29 + $0x58] sm:$0xff]  ;;  %v463_v39 = vld [vmem:[%s1513_s11 + $0x50] sm:$0xff]  ;;  %v291_v43 = vld [vmem:[%s1499_s29 + $0x60] sm:$0xff] }
  0x22   : > { %v464_v40 = vld [vmem:[%s1513_s11 + $0x58] sm:$0xff]  ;;  %v1161_v41 = vpack.c.bf16 %v290_v38, %v289_v37  ;;  %v292_v44 = vld [vmem:[%s1499_s29 + $0x68] sm:$0xff]  ;;  %v465_v45 = vld [vmem:[%s1513_s11 + $0x60] sm:$0xff]  ;;  %s913_s29 = sshll.u32 %s250_s27, 3 }
  0x23   : > { %v1203_v42 = vpack.c.bf16 %v464_v40, %v463_v39  ;;  %v466_v46 = vld [vmem:[%s1513_s11 + $0x68] sm:$0xff]  ;;  %v1167_v47 = vpack.c.bf16 %v292_v44, %v291_v43  ;;  %v594_v49 = vld [vmem:[%s1589_s14] sm:$0xff]  ;;  %v596_v52 = vld [vmem:[%s1589_s14 + $0x10] sm:$0xff]  ;;  %s252_s30 = scalar_lea.vmem [#allocation4], %s913_s29  ;;  %s972_s11 = sshll.u32 %s1444_s0, 7 }
  0x24   : > { %v1209_v48 = vpack.c.bf16 %v466_v46, %v465_v45  ;;  %v595_v50 = vld [vmem:[%s1589_s14 + $0x8] sm:$0xff]  ;;  %v597_v53 = vld [vmem:[%s1589_s14 + $0x18] sm:$0xff]  ;;  %v598_v58 = vld [vmem:[%s1589_s14 + $0x20] sm:$0xff]  ;;  %s826_s10 = sshll.u32 %s252_s30, 4  ;;  %s1709_s15 = scalar_lea.hbm %s1755_s6, %s972_s11  ;;  %s1704_s10 = int_to_ptr.vmem [resolvable:$true] %s826_s10 }
  0x25   : > { %v1215_v51 = vpack.c.bf16 %v595_v50, %v594_v49  ;;  %v1221_v56 = vpack.c.bf16 %v597_v53, %v596_v52  ;;  %v599_v59 = vld [vmem:[%s1589_s14 + $0x28] sm:$0xff]  ;;  %v600_v61 = vld [vmem:[%s1589_s14 + $0x30] sm:$0xff]  ;;  %v601_v62 = vld [vmem:[%s1589_s14 + $0x38] sm:$0xff]  ;;  %s1319_s17 = scalar_lea.vmem %s1704_s10, 128  ;;  %s1384_s0 = smov [#allocation4]  }
  0x26   : > { %1142 = vmatpush3.bf16.xpose.msk.msra.mxu0 %vm1503_vm1, %v1137_v15  ;;  %v1227_v60 = vpack.c.bf16 %v599_v59, %v598_v58  ;;  %v1233_v63 = vpack.c.bf16 %v601_v62, %v600_v61  ;;  %v603_v1 = vld [vmem:[%s1589_s14 + $0x48] sm:$0xff]  ;;  %v604_v3 = vld [vmem:[%s1589_s14 + $0x50] sm:$0xff]  ;;  %v605_v4 = vld [vmem:[%s1589_s14 + $0x58] sm:$0xff]  ;;  %p1320_p11 = scmp.ne.s32.totalorder %s1704_s10, %s1319_s17  ;;  %s1323_s18 = sshll.u32 %s1384_s0, 4  ;;  %s1324_s18 = int_to_ptr.vmem [resolvable:$false] %s1323_s18 }
  0x27   : > { %1184 = vmatpush3.bf16.xpose.msk.msra.mxu1 %vm1503_vm1, %v1179_v18  ;;  %1145 = vmatprep.subr.msk.bf16.mxu0 %vm1503_vm1, %v1143_v23  ;;  %v1245_v5 = vpack.c.bf16 %v605_v4, %v604_v3  ;;  %v606_v7 = vld [vmem:[%s1589_s14 + $0x60] sm:$0xff]  ;;  %v607_v8 = vld [vmem:[%s1589_s14 + $0x68] sm:$0xff]  ;;  %s1325_s19 = scalar_lea.vmem %s1324_s18, 256  ;;  %p1326_p0 = scmp.lt.s32.totalorder %s1704_s10, %s1324_s18 }
  0x28   : > { %1187 = vmatprep.subr.msk.bf16.mxu1 %vm1503_vm1, %v1185_v24  ;;  %v1251_v9 = vpack.c.bf16 %v607_v8, %v606_v7  ;;  %p1321_p12 = pnand %p1320_p11, %p1461_p5  ;;  %p1327_p1 = scmp.lt.s32.totalorder %s1325_s19, %s1319_s17 }
  0x2a   : > { %p1322_p13 = pneg %p1321_p12  ;;  %p1328_p2 = por %p1327_p1, %p1326_p0 }
  0x2c   : > { %p1329_p3 = pnand %p1328_p2, %p1322_p13 }
  0x2e   : > { %1148 = vmatpush3.bf16.xpose.msk.msra.mxu0 %vm1503_vm1, %v1143_v23 }
  0x2f   : > { %1190 = vmatpush3.bf16.xpose.msk.msra.mxu1 %vm1503_vm1, %v1185_v24  ;;  %1151 = vmatprep.subr.msk.bf16.mxu0 %vm1503_vm1, %v1149_v29 }
  0x30   : > { %1193 = vmatprep.subr.msk.bf16.mxu1 %vm1503_vm1, %v1191_v30 }
  0x36   : > { %1154 = vmatpush3.bf16.xpose.msk.msra.mxu0 %vm1503_vm1, %v1149_v29 }
  0x37   : > { %1196 = vmatpush3.bf16.xpose.msk.msra.mxu1 %vm1503_vm1, %v1191_v30  ;;  %1157 = vmatprep.subr.msk.bf16.mxu0 %vm1503_vm1, %v1155_v35 }
  0x38   : > { %1199 = vmatprep.subr.msk.bf16.mxu1 %vm1503_vm1, %v1197_v36 }
  0x3e   : > { %1160 = vmatpush3.bf16.xpose.msk.msra.mxu0 %vm1503_vm1, %v1155_v35 }
  0x3f   : > { %1202 = vmatpush3.bf16.xpose.msk.msra.mxu1 %vm1503_vm1, %v1197_v36  ;;  %1163 = vmatprep.subr.msk.bf16.mxu0 %vm1503_vm1, %v1161_v41 }
  0x40   : > { %1205 = vmatprep.subr.msk.bf16.mxu1 %vm1503_vm1, %v1203_v42 }
  0x46   : > { %1166 = vmatpush3.bf16.xpose.msk.msra.mxu0 %vm1503_vm1, %v1161_v41 }
  0x47   : > { %1208 = vmatpush3.bf16.xpose.msk.msra.mxu1 %vm1503_vm1, %v1203_v42  ;;  %1169 = vmatprep.subr.msk.bf16.mxu0 %vm1503_vm1, %v1167_v47 }
  0x48   : > { %1211 = vmatprep.subr.msk.bf16.mxu1 %vm1503_vm1, %v1209_v48 }
  0x4e   : > { %1172 = vmatpush3.bf16.xpose.msk.msra.mxu0 %vm1503_vm1, %v1167_v47 }
  0x4f   : > { %1214 = vmatpush3.bf16.xpose.msk.msra.mxu1 %vm1503_vm1, %v1209_v48  ;;  %1217 = vmatprep.subr.msk.bf16.mxu0 %vm1503_vm1, %v1215_v51 }
  0x50   : > { %1257 = vmatprep.subr.msk.bf16.mxu1 %vm1503_vm1, %v1215_v51 }
  0x55   : > { %1058 = vmatmul.mubr.msk.f32.vlgmr.msra.gmra.mrb[0].mxu0 %vm313_vm0, %v272_v54 }
  0x56   : > { %1092 = vmatmul.mubr.msk.f32.vlgmr.msra.gmra.mrb[0].mxu1 %vm313_vm0, %v272_v54  ;;  %1220 = vmatpush3.bf16.xpose.msk.msra.mxu0 %vm1503_vm1, %v1215_v51 }
  0x57   : > { %1264 = vmatpush3.bf16.xpose.msk.msra.mxu1 %vm1503_vm1, %v1215_v51  ;;  %1060 = vmatprep.mubr.msk.f32.mxu0 %vm313_vm0, %v273_v55 }
  0x58   : > { %1094 = vmatprep.mubr.msk.f32.mxu1 %vm313_vm0, %v273_v55  ;;  %1223 = vmatprep.subr.msk.bf16.mxu0 %vm1503_vm1, %v1221_v56 }
  0x59   : > { %1061 = vmatmul.mubr.msk.f32.gmra.mrb[2].mxu0 %vm313_vm0, %v274_v57  ;;  %1258 = vmatprep.subr.msk.bf16.mxu1 %vm1503_vm1, %v1221_v56 }
  0x5a   : > { %1095 = vmatmul.mubr.msk.f32.gmra.mrb[2].mxu1 %vm313_vm0, %v274_v57  ;;  %1125 = vmatprep.mubr.msk.f32.mxu0 %vm313_vm0, %v1475_v0  ;;  %v602_v0 = vld [vmem:[%s1589_s14 + $0x40] sm:$0xff] }
  0x5b   : > { %1128 = vmatprep.mubr.msk.f32.mxu1 %vm313_vm0, %v273_v55  ;;  %v1239_v2 = vpack.c.bf16 %v603_v1, %v602_v0 }
  0x5e   : > { %1226 = vmatpush3.bf16.xpose.msk.msra.mxu0 %vm1503_vm1, %v1221_v56 }
  0x5f   : > { %1265 = vmatpush3.bf16.xpose.msk.msra.mxu1 %vm1503_vm1, %v1221_v56  ;;  %1229 = vmatprep.subr.msk.bf16.mxu0 %vm1503_vm1, %v1227_v60 }
  0x60   : > { %1259 = vmatprep.subr.msk.bf16.mxu1 %vm1503_vm1, %v1227_v60 }
  0x66   : > { %1232 = vmatpush3.bf16.xpose.msk.msra.mxu0 %vm1503_vm1, %v1227_v60 }
  0x67   : > { %1266 = vmatpush3.bf16.xpose.msk.msra.mxu1 %vm1503_vm1, %v1227_v60  ;;  %1235 = vmatprep.subr.msk.bf16.mxu0 %vm1503_vm1, %v1233_v63 }
  0x68   : > { %1260 = vmatprep.subr.msk.bf16.mxu1 %vm1503_vm1, %v1233_v63 }
  0x6e   : > { %1238 = vmatpush3.bf16.xpose.msk.msra.mxu0 %vm1503_vm1, %v1233_v63 }
  0x6f   : > { %1267 = vmatpush3.bf16.xpose.msk.msra.mxu1 %vm1503_vm1, %v1233_v63  ;;  %1241 = vmatprep.subr.msk.bf16.mxu0 %vm1503_vm1, %v1239_v2 }
  0x70   : > { %1261 = vmatprep.subr.msk.bf16.mxu1 %vm1503_vm1, %v1239_v2 }
  0x76   : > { %1244 = vmatpush3.bf16.xpose.msk.msra.mxu0 %vm1503_vm1, %v1239_v2 }
  0x77   : > { %1268 = vmatpush3.bf16.xpose.msk.msra.mxu1 %vm1503_vm1, %v1239_v2  ;;  %1247 = vmatprep.subr.msk.bf16.mxu0 %vm1503_vm1, %v1245_v5 }
  0x78   : > { %1262 = vmatprep.subr.msk.bf16.mxu1 %vm1503_vm1, %v1245_v5 }
  0x7e   : > { %1250 = vmatpush3.bf16.xpose.msk.msra.mxu0 %vm1503_vm1, %v1245_v5 }
  0x7f   : > { %1269 = vmatpush3.bf16.xpose.msk.msra.mxu1 %vm1503_vm1, %v1245_v5  ;;  %1253 = vmatprep.subr.msk.bf16.mxu0 %vm1503_vm1, %v1251_v9 }
  0x80   : > { %1263 = vmatprep.subr.msk.bf16.mxu1 %vm1503_vm1, %v1251_v9 }
  0x86   : > { %1256 = vmatpush3.bf16.xpose.msk.msra.mxu0 %vm1503_vm1, %v1251_v9 }
  0x87   : > { %1270 = vmatpush3.bf16.xpose.msk.msra.mxu1 %vm1503_vm1, %v1251_v9 }
  0x8d   : > { %1126 = vmatmul.mubr.msk.f32.vlgmr.msra.gmra.mrb[4].mxu0 %vm313_vm0, %v272_v54 }
  0x8e   : > { %1129 = vmatmul.mubr.msk.f32.vlgmr.msra.gmra.mrb[4].mxu1 %vm313_vm0, %v274_v57 }
  0x91   : > { %v296_v10 = vpop.permute.xlu0 %295  ;;  %v306_v11 = vpop.permute.xlu1 %305 }
  0x95   : > { %v301_v12 = vpop.permute.xlu0 %300  ;;  %v311_v20 = vpop.permute.xlu1 %310 }
 0x128   : > { %v1059_v13 = vpop.f32.mrb[0].mxu0 }
 0x129   : > { %v1093_v14 = vpop.f32.mrb[0].mxu1  ;;  %v440_v15 = vadd.f32 %v1059_v13, %v301_v12  ;;  %v434_v16 = vpop.f32.mrb[1].mxu0 }
 0x12a   : > { %v581_v17 = vadd.f32 %v1093_v14, %v301_v12  ;;  %v435_v18 = vadd.f32 %v434_v16, %v296_v10  ;;  %v575_v19 = vpop.f32.mrb[1].mxu1  ;;  %v790_v16 = vlaneseq }
 0x12b   : > { %v576_v21 = vadd.f32 %v575_v19, %v296_v10 }
 0x12c   : > { %v736_v22 = vmul.f32 %v581_v17, %v440_v15  ;;  %v1062_v6 = vpop.f32.mrb[2].mxu0 }
 0x12d   : > { %v735_v23 = vmul.f32 %v576_v21, %v435_v18  ;;  %v1096_v24 = vpop.f32.mrb[2].mxu1  ;;  %v444_v25 = vpop.f32.mrb[3].mxu0  ;;  %v450_v26 = vadd.f32 %v1062_v6, %v311_v20  ;;  %v793_v21 = vstv %s792_s21 }
 0x12e   : > { %v741_v27 = vsel %vm739_vm2, %v736_v22, 0.0  ;;  %v445_v28 = vadd.f32 %v444_v25, %v306_v11  ;;  %v585_v29 = vpop.f32.mrb[3].mxu1  ;;  %v591_v30 = vadd.f32 %v1096_v24, %v311_v20 }
 0x12f   : > { %v740_v31 = vsel %vm739_vm2, %v735_v23, 0.0  ;;  %v586_v32 = vadd.f32 %v585_v29, %v306_v11 }
 0x130   : > { %v742_v33 = vadd.f32 %v741_v27, %v740_v31  ;;  %v738_v34 = vmul.f32 %v591_v30, %v450_v26 }
 0x131   : > { %v737_v35 = vmul.f32 %v586_v32, %v445_v28 }
 0x132   : > { %v745_v37 = vsel %vm739_vm2, %v738_v34, 0.0 }
 0x133   : > { %v743_v36 = vsel %vm739_vm2, %v737_v35, 0.0 }
 0x134   : > { %v744_v38 = vadd.f32 %v743_v36, %v742_v33 }
 0x136   : > { %v746_v39 = vadd.f32 %v745_v37, %v744_v38 }
 0x138   : > { %v747_v51 = vrot.slane %v746_v39, 4 }
 0x13a   : > { %v748_v57 = vadd.f32 %v747_v51, %v746_v39 }
 0x13c   : > { %v749_v61 = vrot.slane %v748_v57, 2 }
 0x13e   : > { %v750_v0 = vadd.f32 %v749_v61, %v748_v57 }
 0x140   : > { %v751_v3 = vrot.slane %v750_v0, 1 }
 0x142   : > { %v752_v7 = vadd.f32 %v751_v3, %v750_v0 }
 0x160   : > { %v1127_v40 = vpop.f32.mrb[4].mxu0 }
 0x161   : > { %v722_v41 = vadd.f32 %v1127_v40, %v301_v12  ;;  %v1130_v42 = vpop.f32.mrb[4].mxu1  ;;  %v716_v43 = vpop.f32.mrb[5].mxu0 }
 0x162   : > { %v732_v44 = vadd.f32 %v1130_v42, %v311_v20  ;;  %v717_v45 = vadd.f32 %v716_v43, %v296_v10  ;;  %v726_v46 = vpop.f32.mrb[5].mxu1 }
 0x163   : > { %v754_v47 = vmul.f32 %v722_v41, %v440_v15  ;;  %v727_v48 = vadd.f32 %v726_v46, %v306_v11 }
 0x164   : > { %v756_v49 = vmul.f32 %v732_v44, %v450_v26  ;;  %v753_v50 = vmul.f32 %v717_v45, %v435_v18  ;;  %v791_v18 = vand.u32 127, %v790_v16  ;;  %v796_v26 = vstv %s795_s22 }
 0x165   : > { %v758_v52 = vsel %vm739_vm2, %v754_v47, 0.0  ;;  %v755_v53 = vmul.f32 %v727_v48, %v445_v28 }
 0x166   : > { %v757_v54 = vsel %vm739_vm2, %v753_v50, 0.0  ;;  %v762_v59 = vsel %vm739_vm2, %v756_v49, 0.0  ;;  %v794_v24 = vadd.s32 %v793_v21, %v791_v18 }
 0x167   : > { %v759_v55 = vadd.f32 %v758_v52, %v757_v54  ;;  %v760_v56 = vsel %vm739_vm2, %v755_v53, 0.0 }
 0x168   : > { %vm797_vm5 = vcmp.lt.s32.totalorder %v794_v24, %v796_v26 }
 0x169   : > { %v761_v58 = vadd.f32 %v760_v56, %v759_v55 }
 0x16b   : > { %v763_v60 = vadd.f32 %v762_v59, %v761_v58 }
 0x16d   : > { %v764_v62 = vrot.slane %v763_v60, 4 }
 0x16f   : > { %v765_v63 = vadd.f32 %v764_v62, %v763_v60 }
 0x171   : > { %v766_v1 = vrot.slane %v765_v63, 2 }
 0x173   : > { %v767_v2 = vadd.f32 %v766_v1, %v765_v63 }
 0x175   : > { %v768_v4 = vrot.slane %v767_v2, 1 }
 0x177   : > { %v769_v5 = vadd.f32 %v768_v4, %v767_v2 }
 0x179   : > { %v770_v8 = vsub.f32 0.0, %v769_v5 }
 0x17b   : > { %v772_v9 = vsel %vm771_vm3, %v752_v7, %v770_v8 }
 0x17c   : > { %v775_v10 = vand.u32 2147483647, %v772_v9  ;;  %v773_v19 = vsub.f32 0.0, %v772_v9 }
 0x17e   : > { %v776_v11 = vsub.f32 0.0, %v775_v10  ;;  %v774_v25 = vmax.f32 %v773_v19, 0.0 }
 0x180   : > { %v777_v12 = vmul.f32 1.442695, %v776_v11 }
 0x182   : > { %1315 = vpow2.f32 %v777_v12 }
 0x18c   : > { %v1316_v13 = vpop.eup %1315 }
 0x18d   : > { %v779_v14 = vadd.f32 1.0, %v1316_v13  ;;  %v782_v15 = vmul.f32 -0.5, %v1316_v13  ;;  %v785_v20 = vand.u32 2147483647, %v1316_v13 }
 0x18f   : > { %1317 = vlog2.f32 %v779_v14  ;;  %v783_v17 = vadd.f32 1.0, %v782_v15  ;;  %vm786_vm4 = vcmp.lt.f32.partialorder %v785_v20, 0.0004427343 }
 0x191   : > { %v784_v23 = vmul.f32 %v1316_v13, %v783_v17 }
 0x199   : > { %v1318_v22 = vpop.eup %1317 }
 0x19a   : > { %v781_v6 = vmul.f32 0.6931472, %v1318_v22 }
 0x19c   : > { %v787_v27 = vsel %vm786_vm4, %v784_v23, %v781_v6 }
 0x19d   : > { %v788_v28 = vadd.f32 %v787_v27, %v774_v25 }
 0x19f   : > { %v789_v29 = vsub.f32 0.0, %v788_v28 }
 0x1a1   : > { %v798_v30 = vsel %vm797_vm5, %v789_v29, 0.0 }
 0x1a2   : > { %v800_v31 = vsel %vm799_vm6, %v798_v30, 0.0 }
 0x1a3   : > { %801 = vadd.xlane.f32.xlu0 %v800_v31 }
 0x230   : > { %v802_v32 = vpop.xlane.xlu0 %801 }
 0x231   : > { %v803_v33 = vrot.slane %v802_v32, 4 }
 0x233   : > { %v804_v34 = vadd.f32 %v803_v33, %v802_v32 }
 0x235   : > { %v805_v35 = vrot.slane %v804_v34, 2 }
 0x237   : > { %v806_v36 = vadd.f32 %v805_v35, %v804_v34 }
 0x239   : > { %v807_v37 = vrot.slane %v806_v36, 1 }
 0x23b   : > { %v808_v38 = vadd.f32 %v807_v37, %v806_v36 }
 0x23d   : > { %1271 = vpush %v808_v38 }
 0x26e   : > { %s1272_s12 = spop %1271 }
 0x26f   : > { %v810_v39 = vstv %s1272_s12 }
 0x270   : > { %811 = vst [vmem:[%s252_s30] sm:$0xff] %v810_v39 }
 0x271   : > { %1332 = shalt.err (!%p1329_p3)
}
 0x272   : > { %s1333_s20 = scalar_lea.hbm %s1709_s15, 128  ;;  %s1337_s27 = scalar_lea.hbm %s1755_s6, 256 }
 0x273   : > { %p1334_p4 = scmp.ne.s32.totalorder %s1709_s15, %s1333_s20  ;;  %p1338_p9 = scmp.lt.u32.totalorder %s1709_s15, %s1755_s6 }
 0x274   : > { %p1339_p10 = scmp.lt.u32.totalorder %s1337_s27, %s1333_s20  ;;  %p1341_p12 = scmp.lt.u32.totalorder %s1333_s20, %s1709_s15 }
 0x275   : > { %p1335_p7 = pnand %p1334_p4, %p1461_p5 }
 0x276   : > { %p1340_p11 = por %p1339_p10, %p1338_p9 }
 0x277   : > { %p1336_p8 = pneg %p1335_p7 }
 0x278   : > { %p1342_p13 = por %p1341_p12, %p1340_p11 }
 0x27a   : > { %p1343_p0 = pnand %p1342_p13, %p1336_p8 }
 0x27c   : > { %1346 = shalt.err (!%p1343_p0)
}
 0x27d   : > { %1273 = dma.vmem_to_hbm [thread:$0]  (%p1461_p5), %s1704_s10, 128, %s1709_s15, %s813_s16  }
 0x27e PF: > { %p1279_p1 = scmp.ge.s32.totalorder %s1381_s26, 2  ;;  %s838_s11 = sand.u32 1, %s1369_s23  }
 0x27f   : > { %s839_s12 = scalar_lea.sflag [#allocation5], %s838_s11 }
 0x280   : > { %p1276_p2 = pnand %p1279_p1, %p1465_p6 }
 0x282   : > { %1364 = dma.done.wait (!%p1276_p2), %s839_s12, 128  }
 0x283   : > { %1366 = vsyncadd (!%p1276_p2), %s839_s12, 4294967168  ;;  %p17_p3 = scmp.ge.s32.totalorder %s1448_s28, 4   ;;  %s1760_s23 = smov %s1373_s24 }
 0x284   : > { %s1761_s24 = smov %s1377_s25  ;;  %s1762_s25 = smov %s1459_s7 }
 0x285   : > { %s1763_s26 = smov %s1448_s28  ;;  %19 = sbr.rel (!%p17_p3) target bundleno = 5 (0x5), region = 81 }
 0x28c   :  { %844 = vsyncpa [#allocation5], 1 }
 0x28d   :  { %846 = vsyncpa [#allocation5 + $0x1], 1 }

</bundles_post_ra>
